<compile_context>
chip_gen: v7x
topology: tpu7x:2x2x1
jax: 0.10.0
libtpu: 0.0.40
codegen_flags: <defaults>
</compile_context>

<pallas_src>
import dataclasses
import jax
import jax.numpy as jnp
from jax import lax
from jax.experimental import pallas as pl
from jax.experimental.pallas import tpu as pltpu


@dataclasses.dataclass
class TeacherConfig:
    bias: bool = True


@dataclasses.dataclass
class DataConfig:
    input_dim: int = 32
    num_labels: int = 16


_SUBLANE = 8            # f32 sublane granularity for the row (second-to-last) block dim
_TM_MAX = 2048          # row-tile cap; x+out double-buffered tiles stay << VMEM everywhere
_MIN_PALLAS_BATCH = 256  # below this a fused XLA dot beats pallas_call fixed overhead


def _round_up(n: int, m: int) -> int:
    return ((n + m - 1) // m) * m


def _cdiv(a: int, b: int) -> int:
    return (a + b - 1) // b


# -----------------------------------------------------------------------------
# Kernels: one grid step computes one (TM, D_out) output row-tile.
#   x_ref: (TM, D_in)  any float dtype -> cast to bf16 for the MXU
#   w_ref: (D_out, D_in) bf16, native PyTorch layout, resident across steps
#   b_ref: (1, D_out)  f32
# Contraction on the last dim of both operands; f32 MXU accumulation; f32
# bias add / store (VPU fast path on v5e as well).
# -----------------------------------------------------------------------------
def _linear_bias_kernel(x_ref, w_ref, b_ref, o_ref):
    acc = lax.dot_general(
        x_ref[...].astype(jnp.bfloat16), w_ref[...],
        dimension_numbers=(((1,), (1,)), ((), ())),
        preferred_element_type=jnp.float32)
    o_ref[...] = (acc + b_ref[...]).astype(o_ref.dtype)


def _linear_nobias_kernel(x_ref, w_ref, o_ref):
    acc = lax.dot_general(
        x_ref[...].astype(jnp.bfloat16), w_ref[...],
        dimension_numbers=(((1,), (1,)), ((), ())),
        preferred_element_type=jnp.float32)
    o_ref[...] = acc.astype(o_ref.dtype)


def prepare_params(weight, bias=None):
    """One-time parameter prep (hoisted out of the per-call path).

    Casts W to bf16 (halves its HBM footprint; native MXU input type) and
    reshapes b to (1, D_out) f32.  Keeps the native (D_out, D_in) layout:
    no transpose, no padding.
    """
    w_prep = weight.astype(jnp.bfloat16)
    b_prep = None if bias is None else bias.astype(jnp.float32).reshape(1, -1)
    return w_prep, b_prep


def _pick_row_tile(B: int) -> int:
    if B < _SUBLANE:
        return B                                    # block == full row extent (legal)
    tm = min(_TM_MAX, (B // _SUBLANE) * _SUBLANE)   # multiple of 8, <= B
    # v7x has 2 TensorCores: make sure the "parallel" row axis has >= 2 steps
    # whenever there is enough work to split (costs nothing on v5e/v6e).
    if _cdiv(B, tm) < 2 and B >= 2 * _SUBLANE:
        tm = max(_SUBLANE, _round_up(_cdiv(B, 2), _SUBLANE))
    return tm


def regression_net_forward(x, w_prep, b_prep=None, *, force_pallas=False):
    """Forward pass of RegressionNet (== torch.nn.Linear).

    Args:
      x:       (B, D_in) float (f32 or bf16)
      w_prep:  (D_out, D_in) bf16 from prepare_params (native PyTorch layout)
      b_prep:  (1, D_out) f32 from prepare_params, or None
    Returns:
      (B, D_out) float32
    """
    B, D_in = x.shape
    D_out, D_in_w = w_prep.shape
    assert D_in_w == D_in

    if B < _MIN_PALLAS_BATCH and not force_pallas:
        # Small-batch fast path: fused XLA dot (same bf16-input / f32-acc numerics).
        y = lax.dot_general(
            x.astype(jnp.bfloat16), w_prep,
            dimension_numbers=(((1,), (1,)), ((), ())),
            preferred_element_type=jnp.float32)
        return y if b_prep is None else y + b_prep

    TM = _pick_row_tile(B)
    grid = (_cdiv(B, TM),)   # boundary row-blocks are masked; no padding of B

    x_spec = pl.BlockSpec((TM, D_in), lambda i: (i, 0))
    w_spec = pl.BlockSpec((D_out, D_in), lambda i: (0, 0))   # resident weight tile
    o_spec = pl.BlockSpec((TM, D_out), lambda i: (i, 0))
    out_shape = jax.ShapeDtypeStruct((B, D_out), jnp.float32)

    flops = 2 * B * D_in * D_out
    bytes_accessed = (B * D_in * x.dtype.itemsize        # x read
                      + D_out * D_in * 2                  # bf16 weight read
                      + (0 if b_prep is None else D_out * 4)
                      + B * D_out * 4)                    # f32 output write
    cost = pl.CostEstimate(flops=flops, transcendentals=0,
                           bytes_accessed=bytes_accessed)
    compiler_params = pltpu.CompilerParams(dimension_semantics=("parallel",))

    if b_prep is None:
        return pl.pallas_call(
            _linear_nobias_kernel,
            out_shape=out_shape,
            grid=grid,
            in_specs=[x_spec, w_spec],
            out_specs=o_spec,
            compiler_params=compiler_params,
            cost_estimate=cost,
        )(x, w_prep)

    return pl.pallas_call(
        _linear_bias_kernel,
        out_shape=out_shape,
        grid=grid,
        in_specs=[x_spec, w_spec, pl.BlockSpec((1, D_out), lambda i: (0, 0))],
        out_specs=o_spec,
        compiler_params=compiler_params,
        cost_estimate=cost,
    )(x, w_prep, b_prep)


def init_params(key, teacher_config, data_config):
    """Deterministic parameter init mirroring nn.Linear's shapes."""
    k_w, k_b = jax.random.split(key)
    D_in, D_out = data_config.input_dim, data_config.num_labels
    bound = 1.0 / jnp.sqrt(jnp.float32(D_in))
    weight = jax.random.uniform(k_w, (D_out, D_in), jnp.float32, -bound, bound)
    bias = (jax.random.uniform(k_b, (D_out,), jnp.float32, -bound, bound)
            if teacher_config.bias else None)
    return weight, bias


def _bf16_reference(x, weight, bias=None):
    """Reference with the same bf16-input / f32-accumulate numerics."""
    xb = x.astype(jnp.bfloat16).astype(jnp.float32)
    wb = weight.astype(jnp.bfloat16).astype(jnp.float32)
    y = xb @ wb.T
    return y if bias is None else y + bias


if __name__ == "__main__":
    data_config = DataConfig(input_dim=32, num_labels=16)
    key = jax.random.PRNGKey(0)
    k_x, k_x2, k_p = jax.random.split(key, 3)

    # ----- small batch, bias=True: fast path + forced Pallas path -----
    B = 8
    x = jax.random.normal(k_x, (B, data_config.input_dim), jnp.float32)
    weight, bias = init_params(k_p, TeacherConfig(bias=True), data_config)
    w_prep, b_prep = prepare_params(weight, bias)

    ref = _bf16_reference(x, weight, bias)
    y_fast = regression_net_forward(x, w_prep, b_prep)                       # jnp fast path
    y_pallas = regression_net_forward(x, w_prep, b_prep, force_pallas=True)  # Pallas kernel
    jax.block_until_ready((y_fast, y_pallas))
    assert y_pallas.shape == (B, data_config.num_labels)
    assert jnp.allclose(y_fast, ref, atol=1e-4, rtol=1e-4), "fast path mismatch"
    assert jnp.allclose(y_pallas, ref, atol=1e-4, rtol=1e-4), "pallas bias path mismatch"

    # ----- medium batch, bias=False: multi-step grid + boundary masking -----
    B2 = 300   # not a multiple of the row tile -> exercises masked boundary block
    x2 = jax.random.normal(k_x2, (B2, data_config.input_dim), jnp.float32)
    weight_nb, _ = init_params(k_p, TeacherConfig(bias=False), data_config)
    w_prep_nb, _ = prepare_params(weight_nb, None)

    ref2 = _bf16_reference(x2, weight_nb, None)
    y2 = regression_net_forward(x2, w_prep_nb, None, force_pallas=True)
    jax.block_until_ready(y2)
    assert y2.shape == (B2, data_config.num_labels)
    assert jnp.allclose(y2, ref2, atol=1e-4, rtol=1e-4), "pallas no-bias path mismatch"

    print("KERNEL_OK")
</pallas_src>

<mosaic_0001>
module attributes {stable_mosaic.version = 11 : i64} {
  func.func @_linear_bias_kernel(%arg0: i32, %arg1: memref<8x32xf32, #tpu.memory_space<vmem>>, %arg2: memref<16x32xbf16, #tpu.memory_space<vmem>>, %arg3: memref<1x16xf32, #tpu.memory_space<vmem>>, %arg4: memref<8x16xf32, #tpu.memory_space<vmem>>) attributes {dimension_semantics = [#tpu.dimension_semantics<parallel>], iteration_bounds = array<i64: 1>, scalar_prefetch = 0 : i64, scratch_operands = 0 : i64, tpu.core_type = #tpu.core_type<tc>, window_params = [{transform_indices = @transform_0, window_bounds = array<i64: 8, 32>}, {pipeline_mode = #tpu.pipeline_mode<synchronous>, transform_indices = @transform_1, window_bounds = array<i64: 16, 32>}, {pipeline_mode = #tpu.pipeline_mode<synchronous>, transform_indices = @transform_2, window_bounds = array<i64: 1, 16>}, {transform_indices = @transform_3, window_bounds = array<i64: 8, 16>}]} {
    %c0 = arith.constant 0 : index
    %c0_0 = arith.constant 0 : index
    %0 = vector.load %arg1[%c0, %c0_0] : memref<8x32xf32, #tpu.memory_space<vmem>>, vector<8x32xf32>
    %1 = arith.truncf %0 : vector<8x32xf32> to vector<8x32xbf16>
    %c0_1 = arith.constant 0 : index
    %c0_2 = arith.constant 0 : index
    %2 = vector.load %arg2[%c0_1, %c0_2] : memref<16x32xbf16, #tpu.memory_space<vmem>>, vector<16x32xbf16>
    %cst = arith.constant dense<0.000000e+00> : vector<8x16xf32>
    %3 = tpu.matmul %1, %2, %cst {dimension_numbers = #tpu.dot_dimension_numbers<[1], [1], [0], [0], [0, 0, 1, 0], [], []>} : vector<8x32xbf16>, vector<16x32xbf16>, vector<8x16xf32> -> vector<8x16xf32>
    %c0_3 = arith.constant 0 : index
    %c0_4 = arith.constant 0 : index
    %4 = vector.load %arg3[%c0_3, %c0_4] : memref<1x16xf32, #tpu.memory_space<vmem>>, vector<1x16xf32>
    %5 = vector.broadcast %4 : vector<1x16xf32> to vector<8x16xf32>
    %6 = arith.addf %3, %5 : vector<8x16xf32>
    %c0_5 = arith.constant 0 : index
    %c0_6 = arith.constant 0 : index
    %7 = vector.load %arg4[%c0_5, %c0_6] : memref<8x16xf32, #tpu.memory_space<vmem>>, vector<8x16xf32>
    tpu.vector_store %arg4[%c0_5, %c0_6], %6 {strides = array<i32>} : memref<8x16xf32, #tpu.memory_space<vmem>>, vector<8x16xf32>,
    return
  }
  func.func @transform_0(%arg0: i32) -> (i32, i32) {
    %c0_i32 = arith.constant 0 : i32
    %c0_i32_0 = arith.constant 0 : i32
    return %arg0, %c0_i32 : i32, i32
  }
  func.func @transform_1(%arg0: i32) -> (i32, i32) {
    %c0_i32 = arith.constant 0 : i32
    %c0_i32_0 = arith.constant 0 : i32
    %c0_i32_1 = arith.constant 0 : i32
    return %c0_i32, %c0_i32_0 : i32, i32
  }
  func.func @transform_2(%arg0: i32) -> (i32, i32) {
    %c0_i32 = arith.constant 0 : i32
    %c0_i32_0 = arith.constant 0 : i32
    %c0_i32_1 = arith.constant 0 : i32
    return %c0_i32, %c0_i32_0 : i32, i32
  }
  func.func @transform_3(%arg0: i32) -> (i32, i32) {
    %c0_i32 = arith.constant 0 : i32
    %c0_i32_0 = arith.constant 0 : i32
    return %arg0, %c0_i32 : i32, i32
  }
}

</mosaic_0001>

<bundles_post_ra>
// kernel: tpu_custom_call.1
= control target key start
LH: loop header
LB: loop body
LE: loop exit
PB: predicated region body
PF: predicated region fallthrough
CT: control target
= control target key end

     0   :  { %8 = vsyncpa [#allocation3], 0  ;;  %s287_s0 = inlined_call_operand.hbm [shape: f32[8,32], index: 0, kind: input, shape index: {}]   ;;  %s288_s1 = inlined_call_operand.hbm [shape: bf16[16,32], index: 1, kind: input, shape index: {}]   ;;  %s289_s2 = inlined_call_operand.vmem [shape: f32[1,16], index: 2, kind: input, shape index: {}]   ;;  %s290_s3 = inlined_call_operand.hbm [shape: f32[8,16], index: 3, kind: output, shape index: {}]  }
   0x1   :  { %9 = vsyncpa [#allocation6], 0 }
   0x2   :  { %10 = vsyncpa [#allocation4], 0  ;;  %s214_s12 = smov [#allocation2]   ;;  %s215_s14 = smov [#allocation5]  }
   0x3   :  { %s17_s13 = sshll.u32 %s214_s12, 4  ;;  %s26_s15 = sshll.u32 %s215_s14, 4  ;;  %s18_s13 = int_to_ptr.vmem [resolvable:$true] %s17_s13  ;;  %s241_s15 = int_to_ptr.vmem [resolvable:$true] %s26_s15 }
   0x4   :  { %s142_s18 = scalar_lea.hbm %s287_s0, 128 }
   0x5   :  { %p143_p0 = scmp.ne.s32.totalorder %s287_s0, %s142_s18  ;;  %p146_p1 = scmp.lt.u32.totalorder %s142_s18, %s287_s0 }
   0x7   :  { %p148_p2 = pnand %p146_p1, %p143_p0 }
   0x9   :  { %151 = shalt.err (!%p148_p2)
}
   0xa   :  { %s152_s23 = scalar_lea.vmem %s18_s13, 128  ;;  %p157_p4 = scmp.lt.s32.totalorder %s18_s13, %s18_s13 }
   0xb   :  { %p153_p3 = scmp.ne.s32.totalorder %s18_s13, %s152_s23  ;;  %p158_p5 = scmp.lt.s32.totalorder %s152_s23, %s152_s23 }
   0xd   :  { %p159_p6 = por %p158_p5, %p157_p4 }
   0xf   :  { %p160_p7 = pnand %p159_p6, %p153_p3 }
  0x11   :  { %163 = shalt.err (!%p160_p7)
}
  0x12   :  { %20 = dma.hbm_to_vmem [thread:$0]  %s287_s0, 128, %s18_s13, [#allocation3]  }
  0x13   :  { %s164_s28 = scalar_lea.hbm %s288_s1, 128 }
  0x14   :  { %p165_p8 = scmp.ne.s32.totalorder %s288_s1, %s164_s28  ;;  %p168_p9 = scmp.lt.u32.totalorder %s164_s28, %s288_s1 }
  0x16   :  { %p170_p10 = pnand %p168_p9, %p165_p8 }
  0x18   :  { %173 = shalt.err (!%p170_p10)
}
  0x19   :  { %s174_s6 = scalar_lea.vmem %s241_s15, 128  ;;  %p179_p12 = scmp.lt.s32.totalorder %s241_s15, %s241_s15 }
  0x1a   :  { %p175_p11 = scmp.ne.s32.totalorder %s241_s15, %s174_s6  ;;  %p180_p13 = scmp.lt.s32.totalorder %s174_s6, %s174_s6 }
  0x1c   :  { %p181_p0 = por %p180_p13, %p179_p12 }
  0x1e   :  { %p182_p1 = pnand %p181_p0, %p175_p11 }
  0x20   :  { %185 = shalt.err (!%p182_p1)
}
  0x21   :  { %s216_s0 = smov 64   ;;  %s217_s7 = smov 4  }
  0x22   :  { %32 = dma.hbm_to_vmem [thread:$0]  %s288_s1, 128, %s241_s15, [#allocation6], %s216_s0, %s216_s0, %s217_s7  }
  0x23   :  { %208 = dma.done.wait [#allocation3], 128  }
  0x24   :  { %209 = vsyncadd [#allocation3], 4294967168 }
  0x25   :  { %210 = dma.done.wait [#allocation6], 128  }
  0x26   :  { %211 = vsyncadd [#allocation6], 4294967168  ;;  %v218_v0 = vmov 0.0   ;;  %vm219_vm0 = vmmov 0   ;;  %vm58_vm1 = vcmask 261120   ;;  %v141_v1 = vld [vmem:[#allocation5] sm:$0xff]  }
  0x27   :  { %128 = vmatprep.subr.bf16.mxu0 %v218_v0  ;;  %130 = vmatprep.mubr.msk.bf16.mxu0 %vm219_vm0, %v218_v0  ;;  %v63_v2 = vsel %vm58_vm1, %v141_v1, 0  ;;  %v42_v3 = vld [vmem:[#allocation2] sm:$0xff]  ;;  %s220_s1 = smov [#allocation7]   ;;  %vm105_vm2 = vcmask 130048  }
  0x28   :  { %129 = vmatpush3.bf16.xpose.msra.mxu0 %v63_v2  ;;  %v43_v4 = vpack.c.bf16 %v42_v3, %v42_v3  ;;  %v123_v5 = vld [vmem:[%s289_s2] ss:$0 sm:$0xff]  ;;  %s113_s12 = sshll.u32 %s220_s1, 4  ;;  %s114_s12 = int_to_ptr.vmem [resolvable:$true] %s113_s12 }
  0x29   :  { %s186_s13 = scalar_lea.vmem %s114_s12, 128  ;;  %p191_p3 = scmp.lt.s32.totalorder %s114_s12, %s114_s12 }
  0x2a   :  { %p187_p2 = scmp.ne.s32.totalorder %s114_s12, %s186_s13  ;;  %p192_p4 = scmp.lt.s32.totalorder %s186_s13, %s186_s13 }
  0x2c   :  { %p193_p5 = por %p192_p4, %p191_p3 }
  0x2e   :  { %p194_p6 = pnand %p193_p5, %p187_p2 }
  0x2f   :  { %131 = vmatmul.mubr.msk.bf16.vlgmr.msra.gmra.mrb[0].mxu0 %vm58_vm1, %v43_v4 }
 0x102   :  { %v99_v6 = vpop.f32.mrb[0].mxu0 }
 0x103   :  { %v100_v7 = vadd.f32 %v123_v5, %v99_v6  ;;  %v132_v8 = vpop.f32.mrb[1].mxu0 }
 0x104   :  { %v102_v9 = vpop.f32.mrb[2].mxu0 }
 0x105   :  { %v133_v10 = vpop.f32.mrb[3].mxu0  ;;  %106 = vst.msk [vmem:[#allocation7] sm:$0xff] %vm105_vm2, %v100_v7 }
 0x106   :  { %197 = shalt.err (!%p194_p6)
}
 0x107   :  { %s198_s2 = scalar_lea.hbm %s290_s3, 128 }
 0x108   :  { %p199_p7 = scmp.ne.s32.totalorder %s290_s3, %s198_s2  ;;  %p202_p8 = scmp.lt.u32.totalorder %s198_s2, %s290_s3 }
 0x10a   :  { %p204_p9 = pnand %p202_p8, %p199_p7 }
 0x10c   :  { %207 = shalt.err (!%p204_p9)
}
 0x10d   :  { %116 = dma.vmem_to_hbm [thread:$0]  %s114_s12, 128, %s290_s3, [#allocation4]  }
 0x10e   :  { %212 = dma.done.wait [#allocation4], 128  }
 0x10f   :  { %213 = vsyncadd [#allocation4], 4294967168 }
 0x110   :  { %120 = vsyncpa [#allocation3], 1 }
 0x111   :  { %121 = vsyncpa [#allocation6], 1 }
 0x112   :  { %122 = vsyncpa [#allocation4], 1 }

</bundles_post_ra>
